<compile_context>
chip_gen: v6e
topology: v6e:2x2x1
jax: 0.10.0
libtpu: 0.0.40
codegen_flags: <defaults>
</compile_context>

<pallas_src>
import functools

import jax
import jax.numpy as jnp
from jax import lax
from jax.experimental import pallas as pl
from jax.experimental.pallas import tpu as pltpu


# ----------------------------- Pallas kernel ------------------------------ #
def _decoder_kernel(num_layers, hidden_dim, emb_dim,
                    trg_ref, emb_ref, h_ref, c_ref, w_ref, b_ref,
                    wfc_ref, bfc_ref,
                    pred_ref, hout_ref, cout_ref):
    """Single decode step: embed -> L-layer LSTM cell -> output projection.

    trg_ref : (B, 1)      int32 token ids           (VMEM)
    emb_ref : (V, E)      bf16  embedding table
    h_ref   : (L, B, H)   f32,  c_ref: (L, B, H) f32
    w_ref   : (L, D+H, 4H) bf16 fused [W_ih^T ; W_hh^T], D = max(E, H)
    b_ref   : (L, 1, 4H)  f32   fused b_ih + b_hh
    wfc_ref : (H, Vp)     bf16, bfc_ref: (1, Vp) f32   (Vp = V padded to x128)
    pred_ref: (B, Vp) f32, hout_ref/cout_ref: (L, B, H) f32
    """
    H = hidden_dim
    E = emb_dim
    V = emb_ref.shape[0]
    B = trg_ref.shape[0]
    D = max(E, H)

    # ---- Embedding lookup in-kernel: one-hot(B,V) @ table(V,E) on the MXU. ---
    ids = trg_ref[...]                                            # (B, 1) int32
    vocab_iota = lax.broadcasted_iota(jnp.int32, (B, V), 1)
    onehot = (vocab_iota == ids).astype(emb_ref.dtype)            # (B, V) bf16
    # nn.Dropout(embedded): identity in eval mode.
    x = jnp.dot(onehot, emb_ref[...],
                preferred_element_type=jnp.float32)               # (B, E) f32

    # Lane mask selecting the "g" gate (PyTorch gate order: i, f, g, o).
    lane = lax.broadcasted_iota(jnp.int32, (B, 4 * H), 1)
    is_g_gate = (lane >= 2 * H) & (lane < 3 * H)

    for l in range(num_layers):
        h_prev = h_ref[l]                                         # (B, H) f32
        c_prev = c_ref[l]                                         # (B, H) f32

        x_in = x
        if x_in.shape[1] < D:                                     # only if E != H
            pad = jnp.zeros((B, D - x_in.shape[1]), x_in.dtype)
            x_in = jnp.concatenate([x_in, pad], axis=-1)
        xh = jnp.concatenate([x_in, h_prev], axis=-1).astype(jnp.bfloat16)

        # One fused matmul per layer (K = D + H), f32 accumulation, f32 bias.
        gates = (jnp.dot(xh, w_ref[l], preferred_element_type=jnp.float32)
                 + b_ref[l])                                      # (B, 4H) f32

        # Two full-vreg transcendentals + one select (vs 4 quarter-width EUP ops).
        act = jnp.where(is_g_gate, jnp.tanh(gates), jax.nn.sigmoid(gates))
        i_g = act[:, 0:H]
        f_g = act[:, H:2 * H]
        g_g = act[:, 2 * H:3 * H]
        o_g = act[:, 3 * H:4 * H]

        c_new = f_g * c_prev + i_g * g_g
        h_new = o_g * jnp.tanh(c_new)

        hout_ref[l] = h_new
        cout_ref[l] = c_new
        # Inter-layer dropout of nn.LSTM: identity in eval mode.
        x = h_new

    # Output projection; lane-dense (Vp multiple of 128) store.
    pred_ref[...] = (jnp.dot(x.astype(jnp.bfloat16), wfc_ref[...],
                             preferred_element_type=jnp.float32)
                     + bfc_ref[...])


# ------------------- One-time parameter preprocessing ---------------------- #
def prepare_decoder_params(raw):
    """Transpose / fuse / pad / cast weights ONCE (outside the decode loop)."""
    emb = raw["emb"]                                   # (V, E) f32
    V, E = emb.shape
    H = raw["w_hh"][0].shape[1]
    L = len(raw["w_ih"])
    D = max(E, H)
    Vp = ((V + 127) // 128) * 128

    w_layers, b_layers = [], []
    for l in range(L):
        w_ih_t = raw["w_ih"][l].T                      # (in_dim, 4H)
        in_dim = w_ih_t.shape[0]
        if in_dim < D:
            w_ih_t = jnp.pad(w_ih_t, ((0, D - in_dim), (0, 0)))
        w_hh_t = raw["w_hh"][l].T                      # (H, 4H)
        w_layers.append(jnp.concatenate([w_ih_t, w_hh_t], axis=0))       # (D+H, 4H)
        b_layers.append((raw["b_ih"][l] + raw["b_hh"][l]).reshape(1, -1))  # (1, 4H)

    fc_w_t = jnp.pad(raw["fc_w"].T, ((0, 0), (0, Vp - V)))               # (H, Vp)
    fc_b = jnp.pad(raw["fc_b"], (0, Vp - V)).reshape(1, Vp)              # (1, Vp)

    return {
        "emb": emb.astype(jnp.bfloat16),                                 # (V, E)
        "w": jnp.stack(w_layers).astype(jnp.bfloat16),                   # (L, D+H, 4H)
        "b": jnp.stack(b_layers).astype(jnp.float32),                    # (L, 1, 4H)
        "fc_w": fc_w_t.astype(jnp.bfloat16),                             # (H, Vp)
        "fc_b": fc_b.astype(jnp.float32),                                # (1, Vp)
        "dims": (V, E, H, L, D, Vp),
    }


# ------------------------------ Wrapper ------------------------------------ #
def decoder_forward(trg, hidden, cell, p):
    """Single decode step. trg: (B,1) int, hidden/cell: (L,B,H) f32.
    `p` must come from prepare_decoder_params (preprocessing hoisted out)."""
    V, E, H, L, D, Vp = p["dims"]
    B = trg.shape[0]

    vmem = pl.BlockSpec(memory_space=pltpu.MemorySpace.VMEM)
    out_shapes = (
        jax.ShapeDtypeStruct((B, Vp), jnp.float32),     # padded prediction
        jax.ShapeDtypeStruct((L, B, H), jnp.float32),   # new hidden
        jax.ShapeDtypeStruct((L, B, H), jnp.float32),   # new cell
    )
    fn = pl.pallas_call(
        functools.partial(_decoder_kernel, L, H, E),
        out_shape=out_shapes,
        in_specs=[vmem] * 8,
        out_specs=(vmem, vmem, vmem),
    )
    pred_padded, h_new, c_new = fn(
        trg.astype(jnp.int32), p["emb"], hidden, cell,
        p["w"], p["b"], p["fc_w"], p["fc_b"])
    return pred_padded[:, :V], h_new, c_new


# -------------------------- Reference (pure JAX, f32) ----------------------- #
def decoder_forward_ref(trg, hidden, cell, raw):
    x = raw["emb"][trg[:, 0]]
    L, _, H = hidden.shape
    h_out, c_out = [], []
    for l in range(L):
        h_prev, c_prev = hidden[l], cell[l]
        gates = (x @ raw["w_ih"][l].T + raw["b_ih"][l]
                 + h_prev @ raw["w_hh"][l].T + raw["b_hh"][l])
        i_g = jax.nn.sigmoid(gates[:, 0:H])
        f_g = jax.nn.sigmoid(gates[:, H:2 * H])
        g_g = jnp.tanh(gates[:, 2 * H:3 * H])
        o_g = jax.nn.sigmoid(gates[:, 3 * H:4 * H])
        c_new = f_g * c_prev + i_g * g_g
        h_new = o_g * jnp.tanh(c_new)
        h_out.append(h_new)
        c_out.append(c_new)
        x = h_new
    pred = x @ raw["fc_w"].T + raw["fc_b"]
    return pred, jnp.stack(h_out), jnp.stack(c_out)


# ------------------------------- Main -------------------------------------- #
if __name__ == "__main__":
    OUTPUT_DIM = 64        # vocab size
    EMBEDDING_DIM = 32
    HIDDEN_DIM = 32
    NUM_LAYERS = 2
    B = 8                  # >= sublane height; fills vregs / MXU rows

    key = jax.random.PRNGKey(0)
    ks = iter(jax.random.split(key, 16))
    bound = 1.0 / jnp.sqrt(HIDDEN_DIM)

    def unif(k, shape):
        return jax.random.uniform(k, shape, jnp.float32, -bound, bound)

    raw_params = {
        "emb": jax.random.normal(next(ks), (OUTPUT_DIM, EMBEDDING_DIM), jnp.float32),
        # layer 0 takes embedding_dim input; deeper layers take hidden_dim.
        "w_ih": [unif(next(ks), (4 * HIDDEN_DIM,
                                 EMBEDDING_DIM if l == 0 else HIDDEN_DIM))
                 for l in range(NUM_LAYERS)],
        "w_hh": [unif(next(ks), (4 * HIDDEN_DIM, HIDDEN_DIM))
                 for l in range(NUM_LAYERS)],
        "b_ih": [unif(next(ks), (4 * HIDDEN_DIM,)) for l in range(NUM_LAYERS)],
        "b_hh": [unif(next(ks), (4 * HIDDEN_DIM,)) for l in range(NUM_LAYERS)],
        "fc_w": unif(next(ks), (OUTPUT_DIM, HIDDEN_DIM)),
        "fc_b": unif(next(ks), (OUTPUT_DIM,)),
    }

    trg = jax.random.randint(next(ks), (B, 1), 0, OUTPUT_DIM, dtype=jnp.int32)
    hidden = jax.random.normal(jax.random.PRNGKey(1),
                               (NUM_LAYERS, B, HIDDEN_DIM), jnp.float32)
    cell = jax.random.normal(jax.random.PRNGKey(2),
                             (NUM_LAYERS, B, HIDDEN_DIM), jnp.float32)

    # One-time preprocessing (hoisted out of the decode step).
    prepped = prepare_decoder_params(raw_params)

    pred, h_new, c_new = decoder_forward(trg, hidden, cell, prepped)
    jax.block_until_ready((pred, h_new, c_new))

    assert pred.shape == (B, OUTPUT_DIM)
    assert h_new.shape == (NUM_LAYERS, B, HIDDEN_DIM)
    assert c_new.shape == (NUM_LAYERS, B, HIDDEN_DIM)

    # Reference is full f32; kernel stores matmul operands in bf16, so use a
    # tolerance that covers bf16 weight quantization.
    pred_r, h_r, c_r = decoder_forward_ref(trg, hidden, cell, raw_params)
    assert jnp.allclose(pred, pred_r, atol=5e-2), "prediction mismatch"
    assert jnp.allclose(h_new, h_r, atol=5e-2), "hidden mismatch"
    assert jnp.allclose(c_new, c_r, atol=5e-2), "cell mismatch"

    print("KERNEL_OK")
</pallas_src>

<mosaic_0001>
module attributes {stable_mosaic.version = 11 : i64} {
  func.func @_decoder_kernel(%arg0: memref<8x1xi32, #tpu.memory_space<vmem>>, %arg1: memref<64x32xbf16, #tpu.memory_space<vmem>>, %arg2: memref<2x8x32xf32, #tpu.memory_space<vmem>>, %arg3: memref<2x8x32xf32, #tpu.memory_space<vmem>>, %arg4: memref<2x64x128xbf16, #tpu.memory_space<vmem>>, %arg5: memref<2x1x128xf32, #tpu.memory_space<vmem>>, %arg6: memref<32x128xbf16, #tpu.memory_space<vmem>>, %arg7: memref<1x128xf32, #tpu.memory_space<vmem>>, %arg8: memref<8x128xf32, #tpu.memory_space<vmem>>, %arg9: memref<2x8x32xf32, #tpu.memory_space<vmem>>, %arg10: memref<2x8x32xf32, #tpu.memory_space<vmem>>) attributes {dimension_semantics = [], scalar_prefetch = 0 : i64, scratch_operands = 0 : i64, tpu.core_type = #tpu.core_type<tc>} {
    %c0 = arith.constant 0 : index
    %c0_0 = arith.constant 0 : index
    %0 = vector.load %arg0[%c0, %c0_0] : memref<8x1xi32, #tpu.memory_space<vmem>>, vector<8x1xi32>
    %1 = tpu.iota {dimensions = array<i32: 1>} : vector<8x64xi32>
    %2 = vector.broadcast %0 : vector<8x1xi32> to vector<8x64xi32>
    %3 = arith.cmpi eq, %1, %2 : vector<8x64xi32>
    %4 = arith.extui %3 : vector<8x64xi1> to vector<8x64xi32>
    %5 = arith.sitofp %4 : vector<8x64xi32> to vector<8x64xf32>
    %6 = arith.truncf %5 : vector<8x64xf32> to vector<8x64xbf16>
    %c0_1 = arith.constant 0 : index
    %c0_2 = arith.constant 0 : index
    %7 = vector.load %arg1[%c0_1, %c0_2] : memref<64x32xbf16, #tpu.memory_space<vmem>>, vector<64x32xbf16>
    %cst = arith.constant dense<0.000000e+00> : vector<8x32xf32>
    %8 = tpu.matmul %6, %7, %cst {dimension_numbers = #tpu.dot_dimension_numbers<[1], [0], [0], [1], [0, 0, 1, 1], [], []>} : vector<8x64xbf16>, vector<64x32xbf16>, vector<8x32xf32> -> vector<8x32xf32>
    %9 = tpu.iota {dimensions = array<i32: 1>} : vector<8x128xi32>
    %c64_i32 = arith.constant 64 : i32
    %10 = vector.broadcast %c64_i32 : i32 to vector<8x128xi32>
    %11 = arith.cmpi sge, %9, %10 : vector<8x128xi32>
    %c96_i32 = arith.constant 96 : i32
    %12 = vector.broadcast %c96_i32 : i32 to vector<8x128xi32>
    %13 = arith.cmpi slt, %9, %12 : vector<8x128xi32>
    %14 = arith.andi %11, %13 : vector<8x128xi1>
    %c0_3 = arith.constant 0 : index
    %c0_4 = arith.constant 0 : index
    %c0_5 = arith.constant 0 : index
    %15 = vector.load %arg2[%c0_3, %c0_4, %c0_5] : memref<2x8x32xf32, #tpu.memory_space<vmem>>, vector<1x8x32xf32>
    %16 = vector.shape_cast %15 : vector<1x8x32xf32> to vector<8x32xf32>
    %c0_6 = arith.constant 0 : index
    %c0_7 = arith.constant 0 : index
    %c0_8 = arith.constant 0 : index
    %17 = vector.load %arg3[%c0_6, %c0_7, %c0_8] : memref<2x8x32xf32, #tpu.memory_space<vmem>>, vector<1x8x32xf32>
    %18 = vector.shape_cast %17 : vector<1x8x32xf32> to vector<8x32xf32>
    %19 = tpu.concatenate %8, %16 in 1 : vector<8x32xf32>, vector<8x32xf32> -> vector<8x64xf32>
    %20 = arith.truncf %19 : vector<8x64xf32> to vector<8x64xbf16>
    %c0_9 = arith.constant 0 : index
    %c0_10 = arith.constant 0 : index
    %c0_11 = arith.constant 0 : index
    %21 = vector.load %arg4[%c0_9, %c0_10, %c0_11] : memref<2x64x128xbf16, #tpu.memory_space<vmem>>, vector<1x64x128xbf16>
    %22 = vector.shape_cast %21 : vector<1x64x128xbf16> to vector<64x128xbf16>
    %cst_12 = arith.constant dense<0.000000e+00> : vector<8x128xf32>
    %23 = tpu.matmul %20, %22, %cst_12 {dimension_numbers = #tpu.dot_dimension_numbers<[1], [0], [0], [1], [0, 0, 1, 1], [], []>} : vector<8x64xbf16>, vector<64x128xbf16>, vector<8x128xf32> -> vector<8x128xf32>
    %c0_13 = arith.constant 0 : index
    %c0_14 = arith.constant 0 : index
    %c0_15 = arith.constant 0 : index
    %24 = vector.load %arg5[%c0_13, %c0_14, %c0_15] : memref<2x1x128xf32, #tpu.memory_space<vmem>>, vector<1x1x128xf32>
    %25 = vector.shape_cast %24 : vector<1x1x128xf32> to vector<1x128xf32>
    %26 = vector.broadcast %25 : vector<1x128xf32> to vector<8x128xf32>
    %27 = arith.addf %23, %26 : vector<8x128xf32>
    %28 = math.tanh %27 : vector<8x128xf32>
    %29 = arith.negf %27 : vector<8x128xf32>
    %30 = math.exp %29 : vector<8x128xf32>
    %cst_16 = arith.constant 1.000000e+00 : f32
    %31 = vector.broadcast %cst_16 : f32 to vector<8x128xf32>
    %32 = arith.addf %31, %30 : vector<8x128xf32>
    %33 = arith.divf %31, %32 : vector<8x128xf32>
    %34 = arith.select %14, %28, %33 : vector<8x128xi1>, vector<8x128xf32>
    %35 = vector.extract_strided_slice %34 {offsets = [0, 0], sizes = [8, 32], strides = [1, 1]} : vector<8x128xf32> to vector<8x32xf32>
    %36 = vector.extract_strided_slice %34 {offsets = [0, 32], sizes = [8, 32], strides = [1, 1]} : vector<8x128xf32> to vector<8x32xf32>
    %37 = vector.extract_strided_slice %34 {offsets = [0, 64], sizes = [8, 32], strides = [1, 1]} : vector<8x128xf32> to vector<8x32xf32>
    %38 = vector.extract_strided_slice %34 {offsets = [0, 96], sizes = [8, 32], strides = [1, 1]} : vector<8x128xf32> to vector<8x32xf32>
    %39 = arith.mulf %36, %18 : vector<8x32xf32>
    %40 = arith.mulf %35, %37 : vector<8x32xf32>
    %41 = arith.addf %39, %40 : vector<8x32xf32>
    %42 = math.tanh %41 : vector<8x32xf32>
    %43 = arith.mulf %38, %42 : vector<8x32xf32>
    %c0_17 = arith.constant 0 : index
    %c0_18 = arith.constant 0 : index
    %c0_19 = arith.constant 0 : index
    %44 = vector.load %arg9[%c0_17, %c0_18, %c0_19] : memref<2x8x32xf32, #tpu.memory_space<vmem>>, vector<1x8x32xf32>
    %45 = vector.shape_cast %44 : vector<1x8x32xf32> to vector<8x32xf32>
    %46 = vector.shape_cast %43 : vector<8x32xf32> to vector<1x8x32xf32>
    tpu.vector_store %arg9[%c0_17, %c0_18, %c0_19], %46 {strides = array<i32>} : memref<2x8x32xf32, #tpu.memory_space<vmem>>, vector<1x8x32xf32>,
    %c0_20 = arith.constant 0 : index
    %c0_21 = arith.constant 0 : index
    %c0_22 = arith.constant 0 : index
    %47 = vector.load %arg10[%c0_20, %c0_21, %c0_22] : memref<2x8x32xf32, #tpu.memory_space<vmem>>, vector<1x8x32xf32>
    %48 = vector.shape_cast %47 : vector<1x8x32xf32> to vector<8x32xf32>
    %49 = vector.shape_cast %41 : vector<8x32xf32> to vector<1x8x32xf32>
    tpu.vector_store %arg10[%c0_20, %c0_21, %c0_22], %49 {strides = array<i32>} : memref<2x8x32xf32, #tpu.memory_space<vmem>>, vector<1x8x32xf32>,
    %c1 = arith.constant 1 : index
    %c0_23 = arith.constant 0 : index
    %c0_24 = arith.constant 0 : index
    %50 = vector.load %arg2[%c1, %c0_23, %c0_24] : memref<2x8x32xf32, #tpu.memory_space<vmem>>, vector<1x8x32xf32>
    %51 = vector.shape_cast %50 : vector<1x8x32xf32> to vector<8x32xf32>
    %c1_25 = arith.constant 1 : index
    %c0_26 = arith.constant 0 : index
    %c0_27 = arith.constant 0 : index
    %52 = vector.load %arg3[%c1_25, %c0_26, %c0_27] : memref<2x8x32xf32, #tpu.memory_space<vmem>>, vector<1x8x32xf32>
    %53 = vector.shape_cast %52 : vector<1x8x32xf32> to vector<8x32xf32>
    %54 = tpu.concatenate %43, %51 in 1 : vector<8x32xf32>, vector<8x32xf32> -> vector<8x64xf32>
    %55 = arith.truncf %54 : vector<8x64xf32> to vector<8x64xbf16>
    %c1_28 = arith.constant 1 : index
    %c0_29 = arith.constant 0 : index
    %c0_30 = arith.constant 0 : index
    %56 = vector.load %arg4[%c1_28, %c0_29, %c0_30] : memref<2x64x128xbf16, #tpu.memory_space<vmem>>, vector<1x64x128xbf16>
    %57 = vector.shape_cast %56 : vector<1x64x128xbf16> to vector<64x128xbf16>
    %cst_31 = arith.constant dense<0.000000e+00> : vector<8x128xf32>
    %58 = tpu.matmul %55, %57, %cst_31 {dimension_numbers = #tpu.dot_dimension_numbers<[1], [0], [0], [1], [0, 0, 1, 1], [], []>} : vector<8x64xbf16>, vector<64x128xbf16>, vector<8x128xf32> -> vector<8x128xf32>
    %c1_32 = arith.constant 1 : index
    %c0_33 = arith.constant 0 : index
    %c0_34 = arith.constant 0 : index
    %59 = vector.load %arg5[%c1_32, %c0_33, %c0_34] : memref<2x1x128xf32, #tpu.memory_space<vmem>>, vector<1x1x128xf32>
    %60 = vector.shape_cast %59 : vector<1x1x128xf32> to vector<1x128xf32>
    %61 = vector.broadcast %60 : vector<1x128xf32> to vector<8x128xf32>
    %62 = arith.addf %58, %61 : vector<8x128xf32>
    %63 = math.tanh %62 : vector<8x128xf32>
    %64 = arith.negf %62 : vector<8x128xf32>
    %65 = math.exp %64 : vector<8x128xf32>
    %cst_35 = arith.constant 1.000000e+00 : f32
    %66 = vector.broadcast %cst_35 : f32 to vector<8x128xf32>
    %67 = arith.addf %66, %65 : vector<8x128xf32>
    %68 = arith.divf %66, %67 : vector<8x128xf32>
    %69 = arith.select %14, %63, %68 : vector<8x128xi1>, vector<8x128xf32>
    %70 = vector.extract_strided_slice %69 {offsets = [0, 0], sizes = [8, 32], strides = [1, 1]} : vector<8x128xf32> to vector<8x32xf32>
    %71 = vector.extract_strided_slice %69 {offsets = [0, 32], sizes = [8, 32], strides = [1, 1]} : vector<8x128xf32> to vector<8x32xf32>
    %72 = vector.extract_strided_slice %69 {offsets = [0, 64], sizes = [8, 32], strides = [1, 1]} : vector<8x128xf32> to vector<8x32xf32>
    %73 = vector.extract_strided_slice %69 {offsets = [0, 96], sizes = [8, 32], strides = [1, 1]} : vector<8x128xf32> to vector<8x32xf32>
    %74 = arith.mulf %71, %53 : vector<8x32xf32>
    %75 = arith.mulf %70, %72 : vector<8x32xf32>
    %76 = arith.addf %74, %75 : vector<8x32xf32>
    %77 = math.tanh %76 : vector<8x32xf32>
    %78 = arith.mulf %73, %77 : vector<8x32xf32>
    %c1_36 = arith.constant 1 : index
    %c0_37 = arith.constant 0 : index
    %c0_38 = arith.constant 0 : index
    %79 = vector.load %arg9[%c1_36, %c0_37, %c0_38] : memref<2x8x32xf32, #tpu.memory_space<vmem>>, vector<1x8x32xf32>
    %80 = vector.shape_cast %79 : vector<1x8x32xf32> to vector<8x32xf32>
    %81 = vector.shape_cast %78 : vector<8x32xf32> to vector<1x8x32xf32>
    tpu.vector_store %arg9[%c1_36, %c0_37, %c0_38], %81 {strides = array<i32>} : memref<2x8x32xf32, #tpu.memory_space<vmem>>, vector<1x8x32xf32>,
    %c1_39 = arith.constant 1 : index
    %c0_40 = arith.constant 0 : index
    %c0_41 = arith.constant 0 : index
    %82 = vector.load %arg10[%c1_39, %c0_40, %c0_41] : memref<2x8x32xf32, #tpu.memory_space<vmem>>, vector<1x8x32xf32>
    %83 = vector.shape_cast %82 : vector<1x8x32xf32> to vector<8x32xf32>
    %84 = vector.shape_cast %76 : vector<8x32xf32> to vector<1x8x32xf32>
    tpu.vector_store %arg10[%c1_39, %c0_40, %c0_41], %84 {strides = array<i32>} : memref<2x8x32xf32, #tpu.memory_space<vmem>>, vector<1x8x32xf32>,
    %85 = arith.truncf %78 : vector<8x32xf32> to vector<8x32xbf16>
    %c0_42 = arith.constant 0 : index
    %c0_43 = arith.constant 0 : index
    %86 = vector.load %arg6[%c0_42, %c0_43] : memref<32x128xbf16, #tpu.memory_space<vmem>>, vector<32x128xbf16>
    %cst_44 = arith.constant dense<0.000000e+00> : vector<8x128xf32>
    %87 = tpu.matmul %85, %86, %cst_44 {dimension_numbers = #tpu.dot_dimension_numbers<[1], [0], [0], [1], [0, 0, 1, 1], [], []>} : vector<8x32xbf16>, vector<32x128xbf16>, vector<8x128xf32> -> vector<8x128xf32>
    %c0_45 = arith.constant 0 : index
    %c0_46 = arith.constant 0 : index
    %88 = vector.load %arg7[%c0_45, %c0_46] : memref<1x128xf32, #tpu.memory_space<vmem>>, vector<1x128xf32>
    %89 = vector.broadcast %88 : vector<1x128xf32> to vector<8x128xf32>
    %90 = arith.addf %87, %89 : vector<8x128xf32>
    %c0_47 = arith.constant 0 : index
    %c0_48 = arith.constant 0 : index
    %91 = vector.load %arg8[%c0_47, %c0_48] : memref<8x128xf32, #tpu.memory_space<vmem>>, vector<8x128xf32>
    tpu.vector_store %arg8[%c0_47, %c0_48], %90 {strides = array<i32>} : memref<8x128xf32, #tpu.memory_space<vmem>>, vector<8x128xf32>,
    return
  }
}

</mosaic_0001>

<bundles_post_ra>
// kernel: tpu_custom_call.1
= control target key start
LH: loop header
LB: loop body
LE: loop exit
PB: predicated region body
PF: predicated region fallthrough
CT: control target
= control target key end

     0   :  { %16 = vsyncpa [#allocation3], 0  ;;  %s1025_s0 = inlined_call_operand.vmem [shape: s32[8,1], index: 0, kind: input, shape index: {}]   ;;  %s1026_s1 = inlined_call_operand.vmem [shape: bf16[64,32], index: 1, kind: input, shape index: {}]   ;;  %s1027_s2 = inlined_call_operand.hbm [shape: f32[2,8,32], index: 2, kind: input, shape index: {}]   ;;  %s1028_s3 = inlined_call_operand.hbm [shape: f32[2,8,32], index: 3, kind: input, shape index: {}]   ;;  %s1029_s4 = inlined_call_operand.vmem [shape: bf16[2,64,128], index: 4, kind: input, shape index: {}]   ;;  %s1030_s5 = inlined_call_operand.vmem [shape: f32[2,1,128], index: 5, kind: input, shape index: {}]   ;;  %s1031_s6 = inlined_call_operand.hbm [shape: bf16[32,128], index: 6, kind: input, shape index: {}]   ;;  %s1032_s7 = inlined_call_operand.vmem [shape: f32[1,128], index: 7, kind: input, shape index: {}]   ;;  %s1033_s8 = inlined_call_operand.hbm [shape: f32[8,128], index: 8, kind: output, shape index: {0}]   ;;  %s1034_s9 = inlined_call_operand.hbm [shape: f32[2,8,32], index: 9, kind: output, shape index: {1}]   ;;  %s1035_s10 = inlined_call_operand.hbm [shape: f32[2,8,32], index: 10, kind: output, shape index: {2}]  }
   0x1   :  { %17 = vsyncpa [#allocation6], 0 }
   0x2   :  { %18 = vsyncpa [#allocation4], 0 }
   0x3   :  { %19 = vsyncpa [#allocation10], 0  ;;  %s817_s13 = smov [#allocation5]   ;;  %s818_s15 = smov [#allocation2]  }
   0x4   :  { %s41_s14 = sshll.u32 %s817_s13, 4  ;;  %s29_s16 = sshll.u32 %s818_s15, 4  ;;  %s42_s14 = int_to_ptr.vmem [resolvable:$true] %s41_s14  ;;  %s30_s16 = int_to_ptr.vmem [resolvable:$true] %s29_s16 }
   0x5   :  { %s697_s17 = scalar_lea.vmem %s42_s14, 256  ;;  %p702_p1 = scmp.lt.s32.totalorder %s42_s14, %s42_s14 }
   0x6   :  { %p698_p0 = scmp.ne.s32.totalorder %s42_s14, %s697_s17  ;;  %p703_p2 = scmp.lt.s32.totalorder %s697_s17, %s697_s17 }
   0x8   :  { %p704_p3 = por %p703_p2, %p702_p1 }
   0xa   :  { %p705_p4 = pnand %p704_p3, %p698_p0 }
   0xc   :  { %708 = shalt.err (!%p705_p4)
}
   0xd   :  { %s819_s18 = smov 128   ;;  %s820_s19 = smov 8  }
   0xe   :  { %47 = dma.hbm_to_vmem [thread:$0]  %s1028_s3, 256, %s42_s14, [#allocation6], %s819_s18, %s819_s18, %s820_s19  }
   0xf   :  { %s717_s22 = scalar_lea.vmem %s30_s16, 256  ;;  %p722_p6 = scmp.lt.s32.totalorder %s30_s16, %s30_s16 }
  0x10   :  { %p718_p5 = scmp.ne.s32.totalorder %s30_s16, %s717_s22  ;;  %p723_p7 = scmp.lt.s32.totalorder %s717_s22, %s717_s22 }
  0x12   :  { %p724_p8 = por %p723_p7, %p722_p6 }
  0x14   :  { %p725_p9 = pnand %p724_p8, %p718_p5 }
  0x16   :  { %728 = shalt.err (!%p725_p9)
}
  0x17   :  { %35 = dma.hbm_to_vmem [thread:$0]  %s1027_s2, 256, %s30_s16, [#allocation3], %s819_s18, %s819_s18, %s820_s19  }
  0x18   :  { %s821_s25 = smov [#allocation7]  }
  0x19   :  { %s57_s26 = sshll.u32 %s821_s25, 4  ;;  %s58_s26 = int_to_ptr.vmem [resolvable:$true] %s57_s26 }
  0x1a   :  { %s737_s27 = scalar_lea.vmem %s58_s26, 256  ;;  %p742_p11 = scmp.lt.s32.totalorder %s58_s26, %s58_s26 }
  0x1b   :  { %p738_p10 = scmp.ne.s32.totalorder %s58_s26, %s737_s27  ;;  %p743_p12 = scmp.lt.s32.totalorder %s737_s27, %s737_s27 }
  0x1d   :  { %p744_p13 = por %p743_p12, %p742_p11 }
  0x1f   :  { %p745_p0 = pnand %p744_p13, %p738_p10 }
  0x21   :  { %748 = shalt.err (!%p745_p0)
}
  0x22   :  { %s822_s3 = smov 64   ;;  %s823_s28 = smov 4  }
  0x23   :  { %63 = dma.hbm_to_vmem [thread:$0]  %s1031_s6, 256, %s58_s26, [#allocation6], %s822_s3, %s822_s3, %s823_s28  }
  0x24   :  { %809 = dma.done.wait [#allocation3], 256  }
  0x25   :  { %810 = vsyncadd [#allocation3], 4294967040 }
  0x26   :  { %811 = dma.done.wait [#allocation6], 512  }
  0x27   :  { %812 = vsyncadd [#allocation6], 4294966784  ;;  %v824_v0 = vmov 0   ;;  %v825_v1 = vmov 0.0   ;;  %v76_v2 = vld [vmem:[%s1025_s0] sm:$0xff]  ;;  %vm826_vm0 = vmmov 0   ;;  %v77_v11 = vlaneseq }
  0x28   :  { %658 = vset.pattern.permute.xlu0 %v824_v0  ;;  %599 = vmatprep.subr.bf16.mxu0 %v825_v1  ;;  %v659_v3 = vld [vmem:[%s1026_s1 + $0x18] sm:$0xff]   ;;  %v660_v4 = vld [vmem:[%s1026_s1 + $0x10] sm:$0xff]   ;;  %v165_v5 = vld [vmem:[#allocation2] sm:$0xff]  ;;  %s827_s0 = smov 32   ;;  %vm118_vm2 = vcmask 523264   ;;  %vm171_vm3 = vcmask 261120  }
  0x29   :  { %611 = vmatprep.subr.bf16.mxu1 %v825_v1  ;;  %607 = vmatprep.mubr.msk.bf16.mxu0 %vm826_vm0, %v825_v1  ;;  %v663_v6 = vld [vmem:[%s1029_s4 + $0x18] sm:$0xff]   ;;  %v661_v7 = vld [vmem:[%s1026_s1 + $0x8] sm:$0xff]   ;;  %v664_v8 = vld [vmem:[%s1029_s4 + $0x10] sm:$0xff]   ;;  %v78_v12 = vand.u32 127, %v77_v11 }
  0x2a   :  { %619 = vmatprep.mubr.msk.bf16.mxu1 %vm826_vm0, %v825_v1  ;;  %80 = vperm.xlu0 %658, %v76_v2   ;;  %v662_v9 = vld [vmem:[%s1026_s1] sm:$0xff]   ;;  %v665_v10 = vld [vmem:[%s1029_s4 + $0x8] sm:$0xff]   ;;  %v166_v37 = vld [vmem:[#allocation5] sm:$0xff] }
  0x2b   :  { %600 = vmatpush3.bf16.msra.mxu0 %v659_v3  ;;  %612 = vmatpush3.bf16.msra.mxu1 %v663_v6  ;;  %v666_v16 = vld [vmem:[%s1029_s4] sm:$0xff]   ;;  %vm162_vm4 = vcmp.ge.s32.totalorder %v78_v12, 64  ;;  %vm163_vm5 = vcmp.lt.s32.totalorder %v78_v12, 96  ;;  %v667_v44 = vld [vmem:[%s1029_s4 + $0x38] sm:$0xff]   ;;  %v668_v45 = vld [vmem:[%s1029_s4 + $0x30] sm:$0xff]  }
  0x2c   :  { %601 = vmatprep.subr.bf16.mxu0 %v825_v1  ;;  %613 = vmatprep.subr.bf16.mxu1 %v825_v1  ;;  %v554_v24 = vld [vmem:[%s1030_s5] ss:$0 sm:$0xff]  ;;  %vm957_vm6 = vmand %vm162_vm4, %vm163_vm5  ;;  %v669_v46 = vld [vmem:[%s1029_s4 + $0x28] sm:$0xff]  }
  0x2d   :  { %v296_v48 = vld [vmem:[#allocation2 + $0x8] sm:$0xff]  ;;  %v670_v49 = vld [vmem:[%s1029_s4 + $0x20] sm:$0xff]   ;;  %v298_v50 = vld [vmem:[#allocation5 + $0x8] sm:$0xff]  ;;  %s828_s4 = smov 96  }
  0x2e   :  { %168 = vrot.lane.b32.xlu0 %v165_v5, %s827_s0  ;;  %v570_v57 = vld [vmem:[%s1030_s5 + $0x1] ss:$0 sm:$0xff]  ;;  %s829_s5 = smov [#allocation9]  }
  0x2f   :  { %602 = vmatpush3.bf16.msra.mxu0 %v660_v4  ;;  %614 = vmatpush3.bf16.msra.mxu1 %v664_v8 }
  0x30   :  { %603 = vmatprep.subr.bf16.mxu0 %v825_v1  ;;  %615 = vmatprep.subr.bf16.mxu1 %v825_v1 }
  0x33   :  { %604 = vmatpush3.bf16.msra.mxu0 %v661_v7  ;;  %616 = vmatpush3.bf16.msra.mxu1 %v665_v10 }
  0x34   :  { %605 = vmatprep.subr.bf16.mxu0 %v825_v1  ;;  %617 = vmatprep.subr.bf16.mxu1 %v825_v1 }
  0x37   :  { %606 = vmatpush3.bf16.msra.mxu0 %v662_v9  ;;  %618 = vmatpush3.bf16.msra.mxu1 %v666_v16 }
  0x38   :  { %623 = vmatprep.subr.bf16.mxu0 %v825_v1  ;;  %635 = vmatprep.subr.bf16.mxu1 %v825_v1 }
  0xa5   :  { %v81_v13 = vpop.permute.xlu0 %80 }
  0xa6   :  { %vm82_vm1 = vcmp.eq.s32.totalorder %v78_v12, %v81_v13  ;;  %v671_v12 = vld [vmem:[#allocation7 + $0x8] sm:$0xff]   ;;  %v672_v13 = vld [vmem:[#allocation7] sm:$0xff]  }
  0xa7   :  { %v548_v14 = vsel %vm82_vm1, 1.0, %v825_v1 }
  0xa8   :  { %v85_v15 = vpack.c.bf16 %v548_v14, %v548_v14 }
  0xa9   :  { %v169_v17 = vpop.permute.xlu0 %168 }
  0xaa   :  { %608 = vmatmul.mubr.msk.bf16.vlgmr.msra.gmra.mxu0 %vm118_vm2, %v85_v15 }
  0xab   :  { %631 = vmatprep.mubr.msk.bf16.mxu0 %vm826_vm0, %v825_v1  ;;  %624 = vmatpush3.bf16.msra.mxu0 %v667_v44 }
  0xac   :  { %625 = vmatprep.subr.bf16.mxu0 %v825_v1 }
  0xaf   :  { %626 = vmatpush3.bf16.msra.mxu0 %v668_v45 }
  0xb0   :  { %627 = vmatprep.subr.bf16.mxu0 %v825_v1 }
  0xb3   :  { %628 = vmatpush3.bf16.msra.mxu0 %v669_v46 }
  0xb4   :  { %629 = vmatprep.subr.bf16.mxu0 %v825_v1 }
  0xb7   :  { %630 = vmatpush3.bf16.msra.mxu0 %v670_v49 }
 0x16a   :  { %v156_v18 = vpop.f32.mrf.mxu0 }
 0x16b   :  { %v172_v19 = vsel %vm171_vm3, %v156_v18, %v169_v17 }
 0x16c   :  { %v173_v20 = vpack.c.bf16 %v172_v19, %v172_v19  ;;  %v609_v21 = vpop.f32.mrf.mxu0 }
 0x16e   :  { %v159_v22 = vpop.f32.mrf.mxu0  ;;  %620 = vmatmul.mubr.msk.bf16.vlgmr.msra.gmra.mxu1 %vm118_vm2, %v173_v20 }
 0x16f   :  { %639 = vmatprep.mubr.msk.bf16.mxu1 %vm826_vm0, %v825_v1  ;;  %636 = vmatpush3.bf16.msra.mxu1 %v671_v12 }
 0x170   :  { %v610_v23 = vpop.f32.mrf.mxu0  ;;  %637 = vmatprep.subr.bf16.mxu1 %v825_v1 }
 0x173   :  { %638 = vmatpush3.bf16.msra.mxu1 %v672_v13 }
 0x22e   :  { %v250_v25 = vpop.f32.mrf.mxu1 }
 0x22f   :  { %v251_v26 = vadd.f32 %v554_v24, %v250_v25 }
 0x230   :  { %v621_v27 = vpop.f32.mrf.mxu1 }
 0x231   :  { %v560_v28 = vmul.f32 -1.442695, %v251_v26 }
 0x232   :  { %v253_v29 = vpop.f32.mrf.mxu1 }
 0x233   :  { %673 = vpow2.f32 %v560_v28 }
 0x234   :  { %v622_v30 = vpop.f32.mrf.mxu1  ;;  %675 = vtanh.f32 %v251_v26 }
 0x240   :  { %v674_v31 = vpop.eup %673 }
 0x241   :  { %v260_v32 = vadd.f32 1.0, %v674_v31  ;;  %v676_v34 = vpop.eup %675 }
 0x243   :  { %677 = vrcp.f32 %v260_v32 }
 0x250   :  { %v678_v35 = vpop.eup %677 }
 0x251   :  { %v263_v36 = vsel %vm957_vm6, %v676_v34, %v678_v35 }
 0x252   :  { %270 = vrot.lane.b32.xlu1 %v263_v36, %s822_s3 }
 0x256   :  { %265 = vrot.lane.b32.xlu1 %v166_v37, %s827_s0 }
 0x2c4   :  { %v271_v38 = vpop.permute.xlu1 %270 }
 0x2c5   :  { %v273_v39 = vmul.f32 %v271_v38, %v263_v36 }
 0x2c7   :  { %275 = vrot.lane.b32.xlu0 %v273_v39, %s827_s0 }
 0x2c8   :  { %v266_v40 = vpop.permute.xlu1 %265 }
 0x2c9   :  { %v268_v41 = vmul.f32 %v266_v40, %v263_v36 }
 0x339   :  { %v276_v42 = vpop.permute.xlu0 %275 }
 0x33a   :  { %v966_v43 = vadd.f32 %v276_v42, %v268_v41 }
 0x33c   :  { %679 = vtanh.f32 %v966_v43 }
 0x349   :  { %v680_v47 = vpop.eup %679 }
 0x34a   :  { %281 = vrot.lane.b32.xlu1 %v680_v47, %s822_s3 }
 0x34e   :  { %300 = vrot.lane.b32.xlu1 %v296_v48, %s827_s0 }
 0x352   :  { %398 = vrot.lane.b32.xlu1 %v298_v50, %s827_s0 }
 0x3bc   :  { %v282_v51 = vpop.permute.xlu1 %281 }
 0x3bd   :  { %v284_v52 = vmul.f32 %v282_v51, %v263_v36 }
 0x3bf   :  { %286 = vrot.lane.b32.xlu0 %v284_v52, %s827_s0 }
 0x3c0   :  { %v301_v53 = vpop.permute.xlu1 %300 }
 0x3c4   :  { %v399_v8 = vpop.permute.xlu1 %398 }
 0x431   :  { %v287_v54 = vpop.permute.xlu0 %286 }
 0x432   :  { %289 = vst.msk [vmem:[#allocation9] sm:$0xff] %vm171_vm3, %v287_v54  ;;  %v303_v55 = vsel %vm171_vm3, %v287_v54, %v301_v53 }
 0x433   :  { %v304_v56 = vpack.c.bf16 %v303_v55, %v303_v55 }
 0x435   :  { %632 = vmatmul.mubr.msk.bf16.vlgmr.msra.gmra.mxu0 %vm118_vm2, %v304_v56 }
 0x4f5   :  { %v383_v58 = vpop.f32.mrf.mxu0 }
 0x4f6   :  { %v384_v59 = vadd.f32 %v570_v57, %v383_v58 }
 0x4f7   :  { %v633_v60 = vpop.f32.mrf.mxu0 }
 0x4f8   :  { %v576_v61 = vmul.f32 -1.442695, %v384_v59 }
 0x4f9   :  { %v386_v62 = vpop.f32.mrf.mxu0 }
 0x4fa   :  { %681 = vpow2.f32 %v576_v61 }
 0x4fb   :  { %v634_v63 = vpop.f32.mrf.mxu0  ;;  %683 = vtanh.f32 %v384_v59 }
 0x507   :  { %v682_v0 = vpop.eup %681 }
 0x508   :  { %v393_v2 = vadd.f32 1.0, %v682_v0  ;;  %v684_v3 = vpop.eup %683 }
 0x50a   :  { %685 = vrcp.f32 %v393_v2 }
 0x517   :  { %v686_v4 = vpop.eup %685 }
 0x518   :  { %v396_v5 = vsel %vm957_vm6, %v684_v3, %v686_v4 }
 0x519   :  { %403 = vrot.lane.b32.xlu0 %v396_v5, %s822_s3  ;;  %v401_v9 = vmul.f32 %v399_v8, %v396_v5 }
 0x58b   :  { %v404_v6 = vpop.permute.xlu0 %403 }
 0x58c   :  { %v406_v7 = vmul.f32 %v404_v6, %v396_v5 }
 0x58e   :  { %408 = vrot.lane.b32.xlu0 %v406_v7, %s827_s0 }
 0x600   :  { %v409_v10 = vpop.permute.xlu0 %408 }
 0x601   :  { %v411_v11 = vadd.f32 %v409_v10, %v401_v9 }
 0x603   :  { %687 = vtanh.f32 %v411_v11 }
 0x610   :  { %v688_v14 = vpop.eup %687 }
 0x611   :  { %414 = vrot.lane.b32.xlu1 %v688_v14, %s822_s3  ;;  %s516_s3 = sshll.u32 %s829_s5, 4  ;;  %s517_s3 = int_to_ptr.vmem [resolvable:$true] %s516_s3 }
 0x612   :  { %p754_p2 = scmp.lt.s32.totalorder %s517_s3, %s517_s3 }
 0x683   :  { %v415_v15 = vpop.permute.xlu1 %414 }
 0x684   :  { %v417_v16 = vmul.f32 %v415_v15, %v396_v5 }
 0x686   :  { %v430_v17 = vpack.c.bf16 %v417_v16, %v417_v16  ;;  %419 = vrot.lane.b32.xlu1 %v417_v16, %s827_s0 }
 0x688   :  { %443 = vrot.lane.b32.xlu0 %v430_v17, %s827_s0  ;;  %s749_s0 = scalar_lea.vmem %s517_s3, 256 }
 0x689   :  { %p750_p1 = scmp.ne.s32.totalorder %s517_s3, %s749_s0  ;;  %p755_p3 = scmp.lt.s32.totalorder %s749_s0, %s749_s0 }
 0x68a   :  { %425 = vrot.lane.b32.xlu1 %v411_v11, %s828_s4 }
 0x68b   :  { %p756_p4 = por %p755_p3, %p754_p2 }
 0x68c   :  { %291 = vrot.lane.b32.xlu0 %v966_v43, %s828_s4 }
 0x68d   :  { %p757_p5 = pnand %p756_p4, %p750_p1 }
 0x6f8   :  { %v420_v18 = vpop.permute.xlu1 %419 }
 0x6f9   :  { %423 = vst.msk [vmem:[#allocation9 + $0x8] sm:$0xff] %vm171_vm3, %v420_v18 }
 0x6fa   :  { %v444_v19 = vpop.permute.xlu0 %443 }
 0x6fb   :  { %640 = vmatmul.mubr.msk.bf16.vlgmr.msra.gmra.mxu1 %vm171_vm3, %v444_v19 }
 0x6fc   :  { %v426_v1 = vpop.permute.xlu1 %425 }
 0x6fd   :  { %429 = vst.msk [vmem:[#allocation11 + $0x8] sm:$0xff] %vm171_vm3, %v426_v1 }
 0x6fe   :  { %v292_v20 = vpop.permute.xlu0 %291 }
 0x6ff   :  { %294 = vst.msk [vmem:[#allocation11] sm:$0xff] %vm171_vm3, %v292_v20 }
 0x700   :  { %760 = shalt.err (!%p757_p5)
}
 0x701   :  { %522 = dma.vmem_to_hbm [thread:$0]  %s517_s3, 256, %s1034_s9, [#allocation10], %s819_s18, %s819_s18, %s820_s19  }
 0x702   :  { %s830_s22 = smov [#allocation11]  }
 0x703   :  { %s528_s23 = sshll.u32 %s830_s22, 4  ;;  %s529_s23 = int_to_ptr.vmem [resolvable:$true] %s528_s23 }
 0x704   :  { %s769_s24 = scalar_lea.vmem %s529_s23, 256  ;;  %p774_p7 = scmp.lt.s32.totalorder %s529_s23, %s529_s23 }
 0x705   :  { %p770_p6 = scmp.ne.s32.totalorder %s529_s23, %s769_s24  ;;  %p775_p8 = scmp.lt.s32.totalorder %s769_s24, %s769_s24 }
 0x707   :  { %p776_p9 = por %p775_p8, %p774_p7 }
 0x709   :  { %p777_p10 = pnand %p776_p9, %p770_p6 }
 0x70b   :  { %780 = shalt.err (!%p777_p10)
}
 0x70c   :  { %534 = dma.vmem_to_hbm [thread:$0]  %s529_s23, 256, %s1035_s10, [#allocation10], %s819_s18, %s819_s18, %s820_s19  }
 0x70d   :  { %v577_v21 = vld [vmem:[%s1032_s7] ss:$0 sm:$0xff]  ;;  %s831_s9 = smov [#allocation8]  }
 0x70e   :  { %s507_s28 = sshll.u32 %s831_s9, 4  ;;  %s508_s28 = int_to_ptr.vmem [resolvable:$true] %s507_s28 }
 0x70f   :  { %s789_s29 = scalar_lea.vmem %s508_s28, 128  ;;  %p794_p12 = scmp.lt.s32.totalorder %s508_s28, %s508_s28 }
 0x710   :  { %p790_p11 = scmp.ne.s32.totalorder %s508_s28, %s789_s29  ;;  %p795_p13 = scmp.lt.s32.totalorder %s789_s29, %s789_s29 }
 0x712   :  { %p796_p0 = por %p795_p13, %p794_p12 }
 0x714   :  { %p797_p1 = pnand %p796_p0, %p790_p11 }
 0x7bb   :  { %v494_v22 = vpop.f32.mrf.mxu1 }
 0x7bc   :  { %v495_v23 = vadd.f32 %v577_v21, %v494_v22 }
 0x7bd   :  { %v641_v24 = vpop.f32.mrf.mxu1 }
 0x7be   :  { %500 = vst [vmem:[#allocation8] sm:$0xff] %v495_v23 }
 0x7bf   :  { %v497_v25 = vpop.f32.mrf.mxu1 }
 0x7c0   :  { %800 = shalt.err (!%p797_p1)
}
 0x7c1   :  { %510 = dma.vmem_to_hbm [thread:$0]  %s508_s28, 128, %s1033_s8, [#allocation4]   ;;  %v642_v26 = vpop.f32.mrf.mxu1 }
 0x7c2   :  { %813 = dma.done.wait [#allocation4], 128  }
 0x7c3   :  { %814 = vsyncadd [#allocation4], 4294967168 }
 0x7c4   :  { %815 = dma.done.wait [#allocation10], 512  }
 0x7c5   :  { %816 = vsyncadd [#allocation10], 4294966784 }
 0x7c6   :  { %544 = vsyncpa [#allocation3], 1 }
 0x7c7   :  { %545 = vsyncpa [#allocation6], 1 }
 0x7c8   :  { %546 = vsyncpa [#allocation4], 1 }
 0x7c9   :  { %547 = vsyncpa [#allocation10], 1 }

</bundles_post_ra>
